<compile_context>
chip_gen: v6e
topology: v6e:2x2x1
jax: 0.10.0
libtpu: 0.0.40
codegen_flags: <defaults>
</compile_context>

<pallas_src>
import jax
import jax.numpy as jnp
from jax.experimental import pallas as pl
from jax.experimental.pallas import tpu as pltpu

EPS = 1e-5  # nn.LayerNorm default (the module's eps=1e-6 arg is never passed through)

# Fallback budgets if the hardware query is unavailable.
_DEFAULT_TILE_BYTES = 8 * 1024 * 1024
_DEFAULT_VMEM_LIMIT = 48 * 1024 * 1024
_MIN_TILE_LANES = 512                # >= 2 KiB f32 contiguous HBM segments when tiling N
_MIN_GRID_STEPS = 4                  # >= 2 steps per TensorCore (v7x) for pipeline overlap
_MIN_STEPS_BYTES = 2 * 1024 * 1024   # only enforce the min-step heuristic on non-tiny problems


def _vmem_budgets():
    """Generation-aware (per-tile byte budget, vmem_limit_bytes)."""
    tile_budget, vmem_limit = _DEFAULT_TILE_BYTES, _DEFAULT_VMEM_LIMIT
    try:
        cap = getattr(pltpu.get_tpu_info(), "vmem_capacity_bytes", None)
        if cap:
            # in + out, double-buffered => 4 live tiles; keep headroom under the limit.
            # v7x (64 MiB):  limit 48 MiB, ~8 MiB tiles.
            # v6e/v5e (128): limit 64 MiB, ~10 MiB tiles (v5e's 16 MiB scoped default is raised).
            vmem_limit = min(int(cap) * 3 // 4, 64 * 1024 * 1024)
            tile_budget = max(4 * 1024 * 1024, vmem_limit // 6)
    except Exception:
        pass
    return tile_budget, vmem_limit


def _layernorm_kernel(x_ref, w_ref, b_ref, o_ref):
    # x_ref / o_ref: (TR, D, TN) tile — D on the sublane axis, N lane-dense.
    # w_ref / b_ref: (D, 1).
    x = x_ref[...].astype(jnp.float32)
    d = x.shape[1]
    inv_d = jnp.float32(1.0 / d)
    # Two-pass centered moments (numerically safer than E[x^2]-E[x]^2); xc is
    # computed once and reused for both the variance and the normalization.
    # NOTE: for very large D (>= ~256 f32) x/xc live ranges would pressure the
    # 64-vreg file; D is small here so no chunking is needed.
    mean = jnp.sum(x, axis=1, keepdims=True) * inv_d            # XLU sublane reduce
    xc = x - mean
    var = jnp.sum(xc * xc, axis=1, keepdims=True) * inv_d       # biased variance (torch LayerNorm)
    inv = jax.lax.rsqrt(var + EPS)                              # EUP
    w = w_ref[...].astype(jnp.float32)[None, :, :]              # (1, D, 1)
    b = b_ref[...].astype(jnp.float32)[None, :, :]
    o_ref[...] = ((xc * inv) * w + b).astype(o_ref.dtype)


def _largest_divisor_leq(n, cap):
    cap = int(max(1, min(cap, n)))
    for t in range(cap, 0, -1):
        if n % t == 0:
            return t
    return 1


def _round_up(n, m):
    return (n + m - 1) // m * m


def _pick_tiles(R, D, N, itemsize, tile_budget):
    """Choose (tile_r, tile_n, grid_r, grid_n) within the per-tile byte budget."""
    padded_n = _round_up(N, 128)
    if D * padded_n * itemsize <= tile_budget:
        tile_n = N                                   # full lane extent (always legal)
    else:
        # 128-aligned lane tile, capped by the budget, with a >=512-lane floor
        # so HBM DMA segments stay >= 2 KiB (f32) and near streaming bandwidth.
        lanes_by_budget = max(128, (tile_budget // (D * itemsize)) // 128 * 128)
        tile_n = min(lanes_by_budget, padded_n)
        tile_n = max(tile_n, min(_MIN_TILE_LANES, padded_n))
        if tile_n >= N:
            tile_n = N                               # collapses back to full extent
    grid_n = pl.cdiv(N, tile_n)                      # masked edge block if N % tile_n != 0

    row_bytes = D * tile_n * itemsize
    cap_r = max(1, tile_budget // row_bytes)
    tile_r = _largest_divisor_leq(R, cap_r)

    # Keep >= _MIN_GRID_STEPS total steps for non-tiny problems so both v7x
    # TensorCores get >= 2 steps each and prefetch/writeback overlaps.
    if R * D * N * itemsize >= _MIN_STEPS_BYTES:
        while grid_n * (R // tile_r) < _MIN_GRID_STEPS and tile_r > 1:
            tile_r = _largest_divisor_leq(R, max(1, tile_r // 2))

    return tile_r, tile_n, R // tile_r, grid_n


def layernorm_channels(x3d, weight, bias, tile_bytes_budget=None, vmem_limit_bytes=None):
    """LayerNorm over axis 1 (channels D) of a (R, D, N) array, native layout."""
    R, D, N = x3d.shape
    itemsize = jnp.dtype(x3d.dtype).itemsize

    auto_budget, auto_limit = _vmem_budgets()
    tile_budget = int(tile_bytes_budget or auto_budget)
    vmem_limit = int(vmem_limit_bytes or auto_limit)

    tile_r, tile_n, grid_r, grid_n = _pick_tiles(R, D, N, itemsize, tile_budget)

    w2 = weight.reshape(D, 1)
    b2 = bias.reshape(D, 1)

    # Advisory cost for XLA's scheduler: this call is HBM-bandwidth dominated.
    cost = pl.CostEstimate(
        flops=5 * R * D * N,
        transcendentals=R * N,
        bytes_accessed=2 * R * D * N * itemsize + 2 * D * itemsize,
    )

    return pl.pallas_call(
        _layernorm_kernel,
        out_shape=jax.ShapeDtypeStruct((R, D, N), x3d.dtype),
        grid_spec=pltpu.PrefetchScalarGridSpec(
            num_scalar_prefetch=0,
            grid=(grid_r, grid_n),
            in_specs=[
                pl.BlockSpec((tile_r, D, tile_n), lambda i, j: (i, 0, j)),
                pl.BlockSpec((D, 1), lambda i, j: (0, 0)),
                pl.BlockSpec((D, 1), lambda i, j: (0, 0)),
            ],
            out_specs=pl.BlockSpec((tile_r, D, tile_n), lambda i, j: (i, 0, j)),
        ),
        compiler_params=pltpu.CompilerParams(
            dimension_semantics=("parallel", "parallel"),
            vmem_limit_bytes=vmem_limit,
        ),
        cost_estimate=cost,
    )(x3d, w2, b2)


def mscn_layernorm(x, weight, bias, tile_bytes_budget=None):
    """x: (B, M, D, N) -> LayerNorm over the channel dim D -> (B, M, D, N).

    Identical to the module's permute -> nn.LayerNorm(D) -> permute, but done
    in the native layout: reshape-only wrapper (no HBM transposes).
    """
    B, M, D, N = x.shape
    x3 = x.reshape(B * M, D, N)          # pure reshape, no data movement
    y3 = layernorm_channels(x3, weight, bias, tile_bytes_budget=tile_bytes_budget)
    return y3.reshape(B, M, D, N)


def _reference(x, weight, bias):
    mean = jnp.mean(x, axis=2, keepdims=True)
    var = jnp.mean((x - mean) ** 2, axis=2, keepdims=True)
    y = (x - mean) / jnp.sqrt(var + EPS)
    return y * weight[None, None, :, None] + bias[None, None, :, None]


if __name__ == "__main__":
    key = jax.random.PRNGKey(0)
    kx, kw, kb, kx2, kw2, kb2 = jax.random.split(key, 6)

    # --- Primary test: module-sized small shapes, full-extent tile path. ---
    B, M, D, N = 2, 4, 32, 16
    x = jax.random.normal(kx, (B, M, D, N), dtype=jnp.float32)
    # nn.LayerNorm init is ones/zeros; perturb slightly so the affine part is exercised.
    weight = jnp.ones((D,), jnp.float32) + 0.1 * jax.random.normal(kw, (D,), jnp.float32)
    bias = 0.1 * jax.random.normal(kb, (D,), jnp.float32)

    out = mscn_layernorm(x, weight, bias)
    out = jax.block_until_ready(out)
    ref = _reference(x, weight, bias)
    assert out.shape == (B, M, D, N)
    assert jnp.allclose(out, ref, atol=1e-5, rtol=1e-5)

    # --- Robustness test: force the lane-tiled / masked-edge path (N not a
    # multiple of the tile) with an artificially tiny per-tile budget. ---
    B2, M2, D2, N2 = 1, 3, 8, 1100
    x2 = jax.random.normal(kx2, (B2, M2, D2, N2), dtype=jnp.float32)
    w2 = jnp.ones((D2,), jnp.float32) + 0.1 * jax.random.normal(kw2, (D2,), jnp.float32)
    b2 = 0.1 * jax.random.normal(kb2, (D2,), jnp.float32)

    out2 = mscn_layernorm(x2, w2, b2, tile_bytes_budget=8 * 1024)
    out2 = jax.block_until_ready(out2)
    ref2 = _reference(x2, w2, b2)
    assert out2.shape == (B2, M2, D2, N2)
    assert jnp.allclose(out2, ref2, atol=1e-5, rtol=1e-5)

    print("KERNEL_OK")
</pallas_src>

<mosaic_0001>
module attributes {stable_mosaic.version = 11 : i64} {
  func.func @_layernorm_kernel(%arg0: i32, %arg1: i32, %arg2: memref<8x32x16xf32, #tpu.memory_space<vmem>>, %arg3: memref<32x1xf32, #tpu.memory_space<vmem>>, %arg4: memref<32x1xf32, #tpu.memory_space<vmem>>, %arg5: memref<8x32x16xf32, #tpu.memory_space<vmem>>) attributes {dimension_semantics = [#tpu.dimension_semantics<parallel>, #tpu.dimension_semantics<parallel>], iteration_bounds = array<i64: 1, 1>, scalar_prefetch = 0 : i64, scratch_operands = 0 : i64, tpu.core_type = #tpu.core_type<tc>, window_params = [{transform_indices = @transform_0, window_bounds = array<i64: 8, 32, 16>}, {pipeline_mode = #tpu.pipeline_mode<synchronous>, transform_indices = @transform_1, window_bounds = array<i64: 32, 1>}, {pipeline_mode = #tpu.pipeline_mode<synchronous>, transform_indices = @transform_2, window_bounds = array<i64: 32, 1>}, {transform_indices = @transform_3, window_bounds = array<i64: 8, 32, 16>}]} {
    %c0 = arith.constant 0 : index
    %c0_0 = arith.constant 0 : index
    %c0_1 = arith.constant 0 : index
    %0 = vector.load %arg2[%c0, %c0_0, %c0_1] : memref<8x32x16xf32, #tpu.memory_space<vmem>>, vector<8x32x16xf32>
    %cst = arith.constant dense<0.000000e+00> : vector<8x16xf32>
    %1 = vector.multi_reduction <add>, %0, %cst [1] : vector<8x32x16xf32> to vector<8x16xf32>
    %2 = vector.shape_cast %1 : vector<8x16xf32> to vector<8x1x16xf32>
    %cst_2 = arith.constant 3.125000e-02 : f32
    %3 = vector.broadcast %cst_2 : f32 to vector<8x1x16xf32>
    %4 = arith.mulf %2, %3 : vector<8x1x16xf32>
    %5 = vector.broadcast %4 : vector<8x1x16xf32> to vector<8x32x16xf32>
    %6 = arith.subf %0, %5 : vector<8x32x16xf32>
    %7 = arith.mulf %6, %6 : vector<8x32x16xf32>
    %cst_3 = arith.constant dense<0.000000e+00> : vector<8x16xf32>
    %8 = vector.multi_reduction <add>, %7, %cst_3 [1] : vector<8x32x16xf32> to vector<8x16xf32>
    %9 = vector.shape_cast %8 : vector<8x16xf32> to vector<8x1x16xf32>
    %cst_4 = arith.constant 3.125000e-02 : f32
    %10 = vector.broadcast %cst_4 : f32 to vector<8x1x16xf32>
    %11 = arith.mulf %9, %10 : vector<8x1x16xf32>
    %cst_5 = arith.constant 9.99999974E-6 : f32
    %12 = vector.broadcast %cst_5 : f32 to vector<8x1x16xf32>
    %13 = arith.addf %11, %12 : vector<8x1x16xf32>
    %14 = math.rsqrt %13 : vector<8x1x16xf32>
    %c0_6 = arith.constant 0 : index
    %c0_7 = arith.constant 0 : index
    %15 = vector.load %arg3[%c0_6, %c0_7] : memref<32x1xf32, #tpu.memory_space<vmem>>, vector<32x1xf32>
    %16 = vector.shape_cast %15 : vector<32x1xf32> to vector<1x32x1xf32>
    %c0_8 = arith.constant 0 : index
    %c0_9 = arith.constant 0 : index
    %17 = vector.load %arg4[%c0_8, %c0_9] : memref<32x1xf32, #tpu.memory_space<vmem>>, vector<32x1xf32>
    %18 = vector.shape_cast %17 : vector<32x1xf32> to vector<1x32x1xf32>
    %19 = vector.broadcast %14 : vector<8x1x16xf32> to vector<8x32x16xf32>
    %20 = arith.mulf %6, %19 : vector<8x32x16xf32>
    %21 = vector.broadcast %16 : vector<1x32x1xf32> to vector<8x32x16xf32>
    %22 = arith.mulf %20, %21 : vector<8x32x16xf32>
    %23 = vector.broadcast %18 : vector<1x32x1xf32> to vector<8x32x16xf32>
    %24 = arith.addf %22, %23 : vector<8x32x16xf32>
    %c0_10 = arith.constant 0 : index
    %c0_11 = arith.constant 0 : index
    %c0_12 = arith.constant 0 : index
    %25 = vector.load %arg5[%c0_10, %c0_11, %c0_12] : memref<8x32x16xf32, #tpu.memory_space<vmem>>, vector<8x32x16xf32>
    tpu.vector_store %arg5[%c0_10, %c0_11, %c0_12], %24 {strides = array<i32>} : memref<8x32x16xf32, #tpu.memory_space<vmem>>, vector<8x32x16xf32>,
    return
  }
  func.func @transform_0(%arg0: i32, %arg1: i32) -> (i32, i32, i32) {
    %c0_i32 = arith.constant 0 : i32
    %c0_i32_0 = arith.constant 0 : i32
    return %arg0, %c0_i32, %arg1 : i32, i32, i32
  }
  func.func @transform_1(%arg0: i32, %arg1: i32) -> (i32, i32) {
    %c0_i32 = arith.constant 0 : i32
    %c0_i32_0 = arith.constant 0 : i32
    %c0_i32_1 = arith.constant 0 : i32
    return %c0_i32, %c0_i32_0 : i32, i32
  }
  func.func @transform_2(%arg0: i32, %arg1: i32) -> (i32, i32) {
    %c0_i32 = arith.constant 0 : i32
    %c0_i32_0 = arith.constant 0 : i32
    %c0_i32_1 = arith.constant 0 : i32
    return %c0_i32, %c0_i32_0 : i32, i32
  }
  func.func @transform_3(%arg0: i32, %arg1: i32) -> (i32, i32, i32) {
    %c0_i32 = arith.constant 0 : i32
    %c0_i32_0 = arith.constant 0 : i32
    return %arg0, %c0_i32, %arg1 : i32, i32, i32
  }
}

</mosaic_0001>

<bundles_post_ra>
// kernel: tpu_custom_call.1
= control target key start
LH: loop header
LB: loop body
LE: loop exit
PB: predicated region body
PF: predicated region fallthrough
CT: control target
= control target key end

     0   :  { %v550_v0 = vmov 0   ;;  %vm46_vm0 = vcmask 130048   ;;  %s1195_s1 = inlined_call_operand.vmem [shape: f32[32,1], index: 1, kind: input, shape index: {}]   ;;  %s1196_s0 = inlined_call_operand.vmem [shape: f32[8,32,16], index: 0, kind: input, shape index: {}]   ;;  %s1197_s2 = inlined_call_operand.vmem [shape: f32[32,1], index: 2, kind: input, shape index: {}]   ;;  %s1198_s3 = inlined_call_operand.vmem [shape: f32[8,32,16], index: 3, kind: output, shape index: {}]  }
   0x1   :  { %533 = vset.pattern.permute.xlu1 %v550_v0  ;;  %532 = vset.pattern.permute.xlu0 %v550_v0  ;;  %v353_v1 = vld [vmem:[%s1195_s1 + $0x10] sm:$0xff]  ;;  %v351_v2 = vld [vmem:[%s1195_s1] sm:$0xff]  ;;  %v354_v3 = vld [vmem:[%s1195_s1 + $0x18] sm:$0xff] }
   0x2   :  { %403 = vperm.xlu1 %533, %v353_v1   ;;  %393 = vperm.xlu0 %532, %v351_v2   ;;  %v352_v4 = vld [vmem:[%s1195_s1 + $0x8] sm:$0xff]  ;;  %v586_v5 = vld [vmem:[%s1196_s0] sm:$0xff]  ;;  %v596_v7 = vld [vmem:[%s1196_s0 + $0x10] sm:$0xff] }
   0x3   :  { %v591_v6 = vld [vmem:[%s1196_s0 + $0x8] sm:$0xff]  ;;  %v601_v8 = vld [vmem:[%s1196_s0 + $0x18] sm:$0xff]  ;;  %v47_v9 = vsel %vm46_vm0, %v586_v5, 0.0  ;;  %v355_v11 = vld [vmem:[%s1197_s2] sm:$0xff]  ;;  %v50_v16 = vsel %vm46_vm0, %v596_v7, 0.0 }
   0x4   :  { %v356_v10 = vld [vmem:[%s1197_s2 + $0x8] sm:$0xff]  ;;  %v614_v12 = vld [vmem:[%s1196_s0 + $0x20] sm:$0xff]  ;;  %v624_v14 = vld [vmem:[%s1196_s0 + $0x30] sm:$0xff]  ;;  %v48_v15 = vsel %vm46_vm0, %v591_v6, 0.0  ;;  %v52_v17 = vsel %vm46_vm0, %v601_v8, 0.0 }
   0x5   :  { %v619_v13 = vld [vmem:[%s1196_s0 + $0x28] sm:$0xff]  ;;  %v635_v18 = vld [vmem:[%s1196_s0 + $0x38] sm:$0xff]  ;;  %v640_v19 = vld [vmem:[%s1196_s0 + $0x40] sm:$0xff]  ;;  %v49_v21 = vadd.f32 %v48_v15, %v47_v9  ;;  %v60_v22 = vsel %vm46_vm0, %v614_v12, 0.0  ;;  %v63_v24 = vsel %vm46_vm0, %v624_v14, 0.0 }
   0x6   :  { %408 = vperm.xlu1 %533, %v354_v3   ;;  %398 = vperm.xlu0 %532, %v352_v4   ;;  %v645_v20 = vld [vmem:[%s1196_s0 + $0x48] sm:$0xff]  ;;  %v61_v23 = vsel %vm46_vm0, %v619_v13, 0.0  ;;  %v656_v25 = vld [vmem:[%s1196_s0 + $0x50] sm:$0xff]  ;;  %v661_v26 = vld [vmem:[%s1196_s0 + $0x58] sm:$0xff]  ;;  %v65_v29 = vsel %vm46_vm0, %v635_v18, 0.0  ;;  %v73_v30 = vsel %vm46_vm0, %v640_v19, 0.0 }
   0x7   :  { %v666_v27 = vld [vmem:[%s1196_s0 + $0x60] sm:$0xff]  ;;  %v62_v28 = vadd.f32 %v61_v23, %v60_v22  ;;  %v74_v31 = vsel %vm46_vm0, %v645_v20, 0.0  ;;  %v677_v32 = vld [vmem:[%s1196_s0 + $0x68] sm:$0xff]  ;;  %v682_v33 = vld [vmem:[%s1196_s0 + $0x70] sm:$0xff]  ;;  %v51_v35 = vadd.f32 %v50_v16, %v49_v21  ;;  %v76_v37 = vsel %vm46_vm0, %v656_v25, 0.0 }
   0x8   :  { %v687_v34 = vld [vmem:[%s1196_s0 + $0x78] sm:$0xff]  ;;  %v75_v36 = vadd.f32 %v74_v31, %v73_v30  ;;  %v78_v38 = vsel %vm46_vm0, %v661_v26, 0.0  ;;  %v696_v39 = vld [vmem:[%s1196_s0 + $0x80] sm:$0xff]  ;;  %v701_v40 = vld [vmem:[%s1196_s0 + $0x88] sm:$0xff]  ;;  %v86_v43 = vsel %vm46_vm0, %v666_v27, 0.0  ;;  %v87_v44 = vsel %vm46_vm0, %v677_v32, 0.0 }
   0x9   :  { %v706_v41 = vld [vmem:[%s1196_s0 + $0x90] sm:$0xff]  ;;  %v64_v42 = vadd.f32 %v63_v24, %v62_v28  ;;  %v89_v45 = vsel %vm46_vm0, %v682_v33, 0.0  ;;  %v717_v46 = vld [vmem:[%s1196_s0 + $0x98] sm:$0xff]  ;;  %v722_v47 = vld [vmem:[%s1196_s0 + $0xa0] sm:$0xff]  ;;  %v53_v48 = vadd.f32 %v52_v17, %v51_v35  ;;  %v88_v50 = vadd.f32 %v87_v44, %v86_v43 }
   0xa   :  { %450 = vperm.xlu1 %533, %v356_v10   ;;  %445 = vperm.xlu0 %532, %v355_v11   ;;  %v77_v49 = vadd.f32 %v76_v37, %v75_v36  ;;  %v91_v51 = vsel %vm46_vm0, %v687_v34, 0.0  ;;  %v358_v52 = vld [vmem:[%s1197_s2 + $0x18] sm:$0xff]  ;;  %v357_v53 = vld [vmem:[%s1197_s2 + $0x10] sm:$0xff]  ;;  %v99_v55 = vsel %vm46_vm0, %v696_v39, 0.0  ;;  %v100_v56 = vsel %vm46_vm0, %v701_v40, 0.0  ;;  %v741_v58 = vld [vmem:[%s1196_s0 + $0xa8] sm:$0xff] }
   0xb   :  { %v66_v54 = vadd.f32 %v65_v29, %v64_v42  ;;  %v102_v57 = vsel %vm46_vm0, %v706_v41, 0.0  ;;  %v54_v59 = vrot.slane %v53_v48, 4  ;;  %v90_v61 = vadd.f32 %v89_v45, %v88_v50  ;;  %v746_v63 = vld [vmem:[%s1196_s0 + $0xb0] sm:$0xff]  ;;  %v755_v3 = vld [vmem:[%s1196_s0 + $0xc0] sm:$0xff]  ;;  %v760_v4 = vld [vmem:[%s1196_s0 + $0xc8] sm:$0xff] }
   0xc   :  { %v79_v60 = vadd.f32 %v78_v38, %v77_v49  ;;  %v101_v62 = vadd.f32 %v100_v56, %v99_v55  ;;  %v104_v1 = vsel %vm46_vm0, %v717_v46, 0.0  ;;  %v112_v2 = vsel %vm46_vm0, %v722_v47, 0.0  ;;  %v765_v16 = vld [vmem:[%s1196_s0 + $0xb8] sm:$0xff]  ;;  %v772_v22 = vld [vmem:[%s1196_s0 + $0xd0] sm:$0xff]  ;;  %v792_v49 = vld [vmem:[%s1196_s0 + $0xe0] sm:$0xff] }
   0xd   :  { %v67_v0 = vrot.slane %v66_v54, 4  ;;  %v55_v9 = vadd.f32 %v54_v59, %v53_v48  ;;  %v92_v11 = vadd.f32 %v91_v51, %v90_v61  ;;  %v113_v21 = vsel %vm46_vm0, %v741_v58, 0.0  ;;  %v783_v36 = vld [vmem:[%s1196_s0 + $0xd8] sm:$0xff] }
   0xe   :  { %460 = vperm.xlu1 %533, %v358_v52   ;;  %455 = vperm.xlu0 %532, %v357_v53   ;;  %v80_v10 = vrot.slane %v79_v60, 4  ;;  %v103_v15 = vadd.f32 %v102_v57, %v101_v62  ;;  %v115_v29 = vsel %vm46_vm0, %v746_v63, 0.0  ;;  %v114_v30 = vadd.f32 %v113_v21, %v112_v2  ;;  %v797_v53 = vld [vmem:[%s1196_s0 + $0xe8] sm:$0xff]  ;;  %v804_v57 = vld [vmem:[%s1196_s0 + $0xf0] sm:$0xff]  ;;  %v809_v61 = vld [vmem:[%s1196_s0 + $0xf8] sm:$0xff] }
   0xf   :  { %v68_v17 = vadd.f32 %v67_v0, %v66_v54  ;;  %v93_v24 = vrot.slane %v92_v11, 4  ;;  %v125_v31 = vsel %vm46_vm0, %v755_v3, 0.0  ;;  %v126_v35 = vsel %vm46_vm0, %v760_v4, 0.0  ;;  %1207 = vst [vmem:[#allocation2_spill] sm:$0xff] %v809_v61 }
  0x10   :  { %v81_v23 = vadd.f32 %v80_v10, %v79_v60  ;;  %v105_v28 = vadd.f32 %v104_v1, %v103_v15  ;;  %v56_v37 = vrot.slane %v55_v9, 2  ;;  %v117_v43 = vsel %vm46_vm0, %v765_v16, 0.0 }
  0x11   :  { %v94_v38 = vadd.f32 %v93_v24, %v92_v11  ;;  %v116_v44 = vadd.f32 %v115_v29, %v114_v30  ;;  %v127_v45 = vadd.f32 %v126_v35, %v125_v31  ;;  %v128_v48 = vsel %vm46_vm0, %v772_v22, 0.0 }
  0x12   :  { %v106_v42 = vrot.slane %v105_v28, 4  ;;  %v69_v50 = vrot.slane %v68_v17, 2  ;;  %v82_v51 = vrot.slane %v81_v23, 2  ;;  %v130_v56 = vsel %vm46_vm0, %v783_v36, 0.0 }
  0x13   :  { %v118_v54 = vadd.f32 %v117_v43, %v116_v44  ;;  %v129_v55 = vadd.f32 %v128_v48, %v127_v45  ;;  %v57_v59 = vadd.f32 %v56_v37, %v55_v9  ;;  %v95_v60 = vrot.slane %v94_v38, 2 }
  0x14   :  { %v107_v52 = vadd.f32 %v106_v42, %v105_v28  ;;  %v138_v2 = vsel %vm46_vm0, %v792_v49, 0.0  ;;  %v70_v10 = vadd.f32 %v69_v50, %v68_v17  ;;  %v83_v11 = vadd.f32 %v82_v51, %v81_v23 }
  0x15   :  { %v119_v0 = vrot.slane %v118_v54, 4  ;;  %v131_v1 = vadd.f32 %v130_v56, %v129_v55  ;;  %v139_v15 = vsel %vm46_vm0, %v797_v53, 0.0  ;;  %v141_v28 = vsel %vm46_vm0, %v804_v57, 0.0 }
  0x16   :  { %v108_v62 = vrot.slane %v107_v52, 2  ;;  %v140_v9 = vadd.f32 %v139_v15, %v138_v2  ;;  %v58_v29 = vrot.slane %v57_v59, 1  ;;  %v96_v30 = vadd.f32 %v95_v60, %v94_v38 }
  0x17   :  { %v120_v21 = vadd.f32 %v119_v0, %v118_v54  ;;  %v132_v24 = vrot.slane %v131_v1, 4  ;;  %v143_v31 = vsel %vm46_vm0, %v809_v61, 0.0  ;;  %v71_v17 = vrot.slane %v70_v10, 1 }
  0x18   :  { %v109_v35 = vadd.f32 %v108_v62, %v107_v52  ;;  %v142_v43 = vadd.f32 %v141_v28, %v140_v9  ;;  %v84_v23 = vrot.slane %v83_v11, 1  ;;  %v59_v50 = vadd.f32 %v58_v29, %v57_v59 }
  0x19   :  { %v121_v37 = vrot.slane %v120_v21, 2  ;;  %v133_v42 = vadd.f32 %v132_v24, %v131_v1  ;;  %v97_v51 = vrot.slane %v96_v30, 1  ;;  %v72_v0 = vadd.f32 %v71_v17, %v70_v10 }
  0x1a   :  { %v144_v48 = vadd.f32 %v143_v31, %v142_v43  ;;  %v110_v54 = vrot.slane %v109_v35, 1  ;;  %v85_v38 = vadd.f32 %v84_v23, %v83_v11  ;;  %v151_v52 = vmul.f32 0.03125, %v59_v50 }
  0x1b   :  { %v122_v44 = vadd.f32 %v121_v37, %v120_v21  ;;  %v134_v45 = vrot.slane %v133_v42, 2  ;;  %v98_v15 = vadd.f32 %v97_v51, %v96_v30  ;;  %v152_v9 = vmul.f32 0.03125, %v72_v0 }
  0x1c   :  { %v145_v56 = vrot.slane %v144_v48, 4  ;;  %v111_v62 = vadd.f32 %v110_v54, %v109_v35  ;;  %v153_v21 = vmul.f32 0.03125, %v85_v38  ;;  %v820_v59 = vsub.f32 %v586_v5, %v151_v52 }
  0x1d   :  { %v135_v55 = vadd.f32 %v134_v45, %v133_v42  ;;  %v123_v2 = vrot.slane %v122_v44, 1  ;;  %v154_v31 = vmul.f32 0.03125, %v98_v15  ;;  %v823_v29 = vsub.f32 %v591_v6, %v151_v52 }
  0x1e   :  { %v146_v60 = vadd.f32 %v145_v56, %v144_v48  ;;  %v155_v11 = vmul.f32 0.03125, %v111_v62  ;;  %v826_v30 = vsub.f32 %v596_v7, %v151_v52  ;;  %v829_v35 = vsub.f32 %v601_v8, %v151_v52 }
  0x1f   :  { %v136_v61 = vrot.slane %v135_v55, 1  ;;  %v124_v24 = vadd.f32 %v123_v2, %v122_v44  ;;  %v832_v43 = vsub.f32 %v614_v12, %v152_v9  ;;  %v838_v5 = vsub.f32 %v624_v14, %v152_v9 }
  0x20   :  { %v147_v1 = vrot.slane %v146_v60, 2  ;;  %v841_v6 = vsub.f32 %v635_v18, %v152_v9  ;;  %v844_v17 = vsub.f32 %v640_v19, %v153_v21  ;;  %v847_v7 = vsub.f32 %v645_v20, %v153_v21 }
  0x21   :  { %v137_v37 = vadd.f32 %v136_v61, %v135_v55  ;;  %v156_v42 = vmul.f32 0.03125, %v124_v24  ;;  %v835_v61 = vsub.f32 %v619_v13, %v152_v9  ;;  %v850_v8 = vsub.f32 %v656_v25, %v153_v21  ;;  %v1215_v9 = vld [vmem:[#allocation2_spill] sm:$0xff] }
  0x22   :  { %v148_v28 = vadd.f32 %v147_v1, %v146_v60  ;;  %v853_v23 = vsub.f32 %v661_v26, %v153_v21  ;;  %v856_v13 = vsub.f32 %v666_v27, %v154_v31  ;;  %v859_v14 = vsub.f32 %v677_v32, %v154_v31 }
  0x23   :  { %v157_v12 = vmul.f32 0.03125, %v137_v37  ;;  %v862_v19 = vsub.f32 %v682_v33, %v154_v31  ;;  %v865_v20 = vsub.f32 %v687_v34, %v154_v31  ;;  %v868_v25 = vsub.f32 %v696_v39, %v155_v11 }
  0x24   :  { %v149_v10 = vrot.slane %v148_v28, 1  ;;  %v871_v44 = vsub.f32 %v701_v40, %v155_v11  ;;  %v874_v26 = vsub.f32 %v706_v41, %v155_v11  ;;  %v877_v27 = vsub.f32 %v717_v46, %v155_v11 }
  0x25   :  { %v880_v32 = vsub.f32 %v722_v47, %v156_v42  ;;  %v883_v33 = vsub.f32 %v741_v58, %v156_v42  ;;  %v886_v34 = vsub.f32 %v746_v63, %v156_v42  ;;  %v889_v39 = vsub.f32 %v765_v16, %v156_v42 }
  0x26   :  { %v150_v18 = vadd.f32 %v149_v10, %v148_v28  ;;  %1208 = vst [vmem:[#allocation3_spill] sm:$0xff] %v874_v26  ;;  %v191_v40 = vmul.f32 %v820_v59, %v820_v59  ;;  %v894_v41 = vsub.f32 %v755_v3, %v157_v12  ;;  %v897_v46 = vsub.f32 %v760_v4, %v157_v12 }
  0x27   :  { %1209 = vst [vmem:[#allocation4_spill] sm:$0xff] %v883_v33  ;;  %1210 = vst [vmem:[#allocation5_spill] sm:$0xff] %v886_v34  ;;  %v900_v47 = vsub.f32 %v772_v22, %v157_v12  ;;  %v192_v58 = vmul.f32 %v823_v29, %v823_v29  ;;  %v905_v45 = vsub.f32 %v783_v36, %v157_v12 }
  0x28   :  { %1211 = vst [vmem:[#allocation6_spill] sm:$0xff] %v889_v39  ;;  %1212 = vst [vmem:[#allocation7_spill] sm:$0xff] %v894_v41  ;;  %v158_v63 = vmul.f32 0.03125, %v150_v18  ;;  %v193_v16 = vmul.f32 %v826_v30, %v826_v30  ;;  %v194_v3 = vmul.f32 %v829_v35, %v829_v35  ;;  %v195_v4 = vmul.f32 %v832_v43, %v832_v43 }
  0x29   :  { %1213 = vst [vmem:[#allocation8_spill] sm:$0xff] %v897_v46  ;;  %1214 = vst [vmem:[#allocation9_spill] sm:$0xff] %v900_v47  ;;  %v196_v22 = vmul.f32 %v835_v61, %v835_v61  ;;  %v197_v48 = vmul.f32 %v838_v5, %v838_v5  ;;  %v198_v50 = vmul.f32 %v841_v6, %v841_v6  ;;  %v223_v31 = vsel %vm46_vm0, %v191_v40, 0.0 }
  0x2a   :  { %v199_v36 = vmul.f32 %v844_v17, %v844_v17  ;;  %v200_v51 = vmul.f32 %v847_v7, %v847_v7  ;;  %v201_v54 = vmul.f32 %v850_v8, %v850_v8  ;;  %v202_v55 = vmul.f32 %v853_v23, %v853_v23 }
  0x2b   :  { %v203_v56 = vmul.f32 %v856_v13, %v856_v13  ;;  %v204_v0 = vmul.f32 %v859_v14, %v859_v14  ;;  %v205_v2 = vmul.f32 %v862_v19, %v862_v19  ;;  %v206_v38 = vmul.f32 %v865_v20, %v865_v20 }
  0x2c   :  { %v936_v60 = vsub.f32 %v792_v49, %v158_v63  ;;  %v207_v15 = vmul.f32 %v868_v25, %v868_v25  ;;  %v208_v52 = vmul.f32 %v871_v44, %v871_v44  ;;  %v209_v62 = vmul.f32 %v874_v26, %v874_v26 }
  0x2d   :  { %v945_v1 = vsub.f32 %v797_v53, %v158_v63  ;;  %v948_v24 = vsub.f32 %v804_v57, %v158_v63  ;;  %v951_v28 = vsub.f32 %v1215_v9, %v158_v63  ;;  %v210_v49 = vmul.f32 %v877_v27, %v877_v27 }
  0x2e   :  { %v211_v21 = vmul.f32 %v880_v32, %v880_v32  ;;  %v212_v37 = vmul.f32 %v883_v33, %v883_v33  ;;  %v224_v53 = vsel %vm46_vm0, %v192_v58, 0.0  ;;  %v213_v57 = vmul.f32 %v886_v34, %v886_v34 }
  0x2f   :  { %v214_v10 = vmul.f32 %v889_v39, %v889_v39  ;;  %v236_v11 = vsel %vm46_vm0, %v195_v4, 0.0  ;;  %v237_v42 = vsel %vm46_vm0, %v196_v22, 0.0  ;;  %v215_v12 = vmul.f32 %v894_v41, %v894_v41 }
  0x30   :  { %v216_v18 = vmul.f32 %v897_v46, %v897_v46  ;;  %v249_v40 = vsel %vm46_vm0, %v199_v36, 0.0  ;;  %v250_v58 = vsel %vm46_vm0, %v200_v51, 0.0  ;;  %v217_v63 = vmul.f32 %v900_v47, %v900_v47 }
  0x31   :  { %v225_v9 = vadd.f32 %v224_v53, %v223_v31  ;;  %v262_v34 = vsel %vm46_vm0, %v203_v56, 0.0  ;;  %v263_v4 = vsel %vm46_vm0, %v204_v0, 0.0  ;;  %v226_v22 = vsel %vm46_vm0, %v193_v16, 0.0 }
  0x32   :  { %v238_v26 = vadd.f32 %v237_v42, %v236_v11  ;;  %v275_v39 = vsel %vm46_vm0, %v207_v15, 0.0  ;;  %v276_v33 = vsel %vm46_vm0, %v208_v52, 0.0  ;;  %v239_v46 = vsel %vm46_vm0, %v197_v48, 0.0 }
  0x33   :  { %v251_v36 = vadd.f32 %v250_v58, %v249_v40  ;;  %v288_v51 = vsel %vm46_vm0, %v211_v21, 0.0  ;;  %v289_v41 = vsel %vm46_vm0, %v212_v37, 0.0  ;;  %v218_v31 = vmul.f32 %v905_v45, %v905_v45 }
  0x34   :  { %v219_v56 = vmul.f32 %v936_v60, %v936_v60  ;;  %v252_v16 = vsel %vm46_vm0, %v201_v54, 0.0  ;;  %v264_v0 = vadd.f32 %v263_v4, %v262_v34  ;;  %v227_v53 = vadd.f32 %v226_v22, %v225_v9 }
  0x35   :  { %v228_v15 = vsel %vm46_vm0, %v194_v3, 0.0  ;;  %v265_v52 = vsel %vm46_vm0, %v205_v2, 0.0  ;;  %v277_v48 = vadd.f32 %v276_v33, %v275_v39  ;;  %v240_v11 = vadd.f32 %v239_v46, %v238_v26 }
  0x36   :  { %v278_v21 = vsel %vm46_vm0, %v209_v62, 0.0  ;;  %v290_v42 = vadd.f32 %v289_v41, %v288_v51  ;;  %v301_v37 = vsel %vm46_vm0, %v215_v12, 0.0  ;;  %v241_v40 = vsel %vm46_vm0, %v198_v50, 0.0 }
  0x37   :  { %v253_v58 = vadd.f32 %v252_v16, %v251_v36  ;;  %v291_v47 = vsel %vm46_vm0, %v213_v57, 0.0  ;;  %v302_v54 = vsel %vm46_vm0, %v216_v18, 0.0  ;;  %v220_v34 = vmul.f32 %v945_v1, %v945_v1 }
  0x38   :  { %v254_v3 = vsel %vm46_vm0, %v202_v55, 0.0  ;;  %v266_v2 = vadd.f32 %v265_v52, %v264_v0  ;;  %v303_v33 = vadd.f32 %v302_v54, %v301_v37  ;;  %v229_v26 = vadd.f32 %v228_v15, %v227_v53 }
  0x39   :  { %v267_v39 = vsel %vm46_vm0, %v206_v38, 0.0  ;;  %v279_v41 = vadd.f32 %v278_v21, %v277_v48  ;;  %v304_v46 = vsel %vm46_vm0, %v217_v63, 0.0  ;;  %v221_v50 = vmul.f32 %v948_v24, %v948_v24 }
  0x3a   :  { %v242_v62 = vadd.f32 %v241_v40, %v240_v11  ;;  %v280_v57 = vsel %vm46_vm0, %v210_v49, 0.0  ;;  %v292_v12 = vadd.f32 %v291_v47, %v290_v42  ;;  %v222_v18 = vmul.f32 %v951_v28, %v951_v28 }
  0x3b   :  { %v255_v9 = vadd.f32 %v254_v3, %v253_v58  ;;  %v293_v55 = vsel %vm46_vm0, %v214_v10, 0.0  ;;  %v305_v4 = vadd.f32 %v304_v46, %v303_v33  ;;  %v268_v22 = vadd.f32 %v267_v39, %v266_v2 }
  0x3c   :  { %v306_v38 = vsel %vm46_vm0, %v218_v31, 0.0  ;;  %v230_v36 = vrot.slane %v229_v26, 4  ;;  %v281_v51 = vadd.f32 %v280_v57, %v279_v41  ;;  %v314_v63 = vsel %vm46_vm0, %v219_v56, 0.0 }
  0x3d   :  { %v315_v16 = vsel %vm46_vm0, %v220_v34, 0.0  ;;  %v243_v0 = vrot.slane %v242_v62, 4  ;;  %v294_v53 = vadd.f32 %v293_v55, %v292_v12  ;;  %v256_v47 = vrot.slane %v255_v9, 4 }
  0x3e   :  { %v316_v49 = vadd.f32 %v315_v16, %v314_v63  ;;  %v307_v15 = vadd.f32 %v306_v38, %v305_v4  ;;  %v317_v52 = vsel %vm46_vm0, %v221_v50, 0.0  ;;  %v319_v48 = vsel %vm46_vm0, %v222_v18, 0.0 }
  0x3f   :  { %v269_v10 = vrot.slane %v268_v22, 4  ;;  %v231_v21 = vadd.f32 %v230_v36, %v229_v26  ;;  %v282_v42 = vrot.slane %v281_v51, 4  ;;  %v244_v31 = vadd.f32 %v243_v0, %v242_v62 }
  0x40   :  { %v318_v11 = vadd.f32 %v317_v52, %v316_v49  ;;  %v295_v37 = vrot.slane %v294_v53, 4  ;;  %v257_v58 = vadd.f32 %v256_v47, %v255_v9  ;;  %v308_v56 = vrot.slane %v307_v15, 4 }
  0x41   :  { %v270_v54 = vadd.f32 %v269_v10, %v268_v22  ;;  %v232_v3 = vrot.slane %v231_v21, 2  ;;  %v283_v2 = vadd.f32 %v282_v42, %v281_v51  ;;  %v245_v33 = vrot.slane %v244_v31, 2 }
  0x42   :  { %v320_v40 = vadd.f32 %v319_v48, %v318_v11  ;;  %v296_v39 = vadd.f32 %v295_v37, %v294_v53  ;;  %v258_v41 = vrot.slane %v257_v58, 2  ;;  %v309_v46 = vadd.f32 %v308_v56, %v307_v15 }
  0x43   :  { %v271_v50 = vrot.slane %v270_v54, 2  ;;  %v233_v12 = vadd.f32 %v232_v3, %v231_v21  ;;  %v284_v18 = vrot.slane %v283_v2, 2  ;;  %v246_v55 = vadd.f32 %v245_v33, %v244_v31 }
  0x44   :  { %v321_v34 = vrot.slane %v320_v40, 4  ;;  %v297_v26 = vrot.slane %v296_v39, 2  ;;  %v259_v4 = vadd.f32 %v258_v41, %v257_v58  ;;  %v310_v62 = vrot.slane %v309_v46, 2 }
  0x45   :  { %v272_v38 = vadd.f32 %v271_v50, %v270_v54  ;;  %v234_v9 = vrot.slane %v233_v12, 1  ;;  %v285_v63 = vadd.f32 %v284_v18, %v283_v2  ;;  %v247_v22 = vrot.slane %v246_v55, 1 }
  0x46   :  { %v322_v57 = vadd.f32 %v321_v34, %v320_v40  ;;  %v298_v16 = vadd.f32 %v297_v26, %v296_v39  ;;  %v260_v0 = vrot.slane %v259_v4, 1  ;;  %v311_v51 = vadd.f32 %v310_v62, %v309_v46 }
  0x47   :  { %v273_v49 = vrot.slane %v272_v38, 1  ;;  %v235_v47 = vadd.f32 %v234_v9, %v233_v12  ;;  %v286_v15 = vrot.slane %v285_v63, 1  ;;  %v248_v52 = vadd.f32 %v247_v22, %v246_v55 }
  0x48   :  { %v323_v36 = vrot.slane %v322_v57, 2  ;;  %v299_v48 = vrot.slane %v298_v16, 1  ;;  %v261_v10 = vadd.f32 %v260_v0, %v259_v4  ;;  %v312_v11 = vrot.slane %v311_v51, 1 }
  0x49   :  { %v274_v21 = vadd.f32 %v273_v49, %v272_v38  ;;  %v287_v31 = vadd.f32 %v286_v15, %v285_v63  ;;  %v327_v37 = vmul.f32 0.03125, %v235_v47  ;;  %v328_v58 = vmul.f32 0.03125, %v248_v52 }
  0x4a   :  { %v324_v53 = vadd.f32 %v323_v36, %v322_v57  ;;  %v300_v40 = vadd.f32 %v299_v48, %v298_v16  ;;  %v313_v56 = vadd.f32 %v312_v11, %v311_v51  ;;  %v329_v54 = vmul.f32 0.03125, %v261_v10 }
  0x4b   :  { %v330_v3 = vmul.f32 0.03125, %v274_v21  ;;  %v331_v2 = vmul.f32 0.03125, %v287_v31  ;;  %v335_v33 = vadd.f32 1e-05, %v327_v37  ;;  %v336_v41 = vadd.f32 1e-05, %v328_v58 }
  0x4c   :  { %v325_v42 = vrot.slane %v324_v53, 1  ;;  %v332_v39 = vmul.f32 0.03125, %v300_v40  ;;  %v333_v46 = vmul.f32 0.03125, %v313_v56  ;;  %v337_v50 = vadd.f32 1e-05, %v329_v54  ;;  %v1217_v31 = vld [vmem:[#allocation4_spill] sm:$0xff] }
  0x4d   :  { %v338_v12 = vadd.f32 1e-05, %v330_v3  ;;  %v339_v18 = vadd.f32 1e-05, %v331_v2  ;;  %534 = vrsqrt.f32 %v335_v33  ;;  %v1218_v37 = vld [vmem:[#allocation6_spill] sm:$0xff]  ;;  %v1219_v40 = vld [vmem:[#allocation8_spill] sm:$0xff] }
  0x4e   :  { %v326_v34 = vadd.f32 %v325_v42, %v324_v53  ;;  %v340_v55 = vadd.f32 1e-05, %v332_v39  ;;  %536 = vrsqrt.f32 %v336_v41  ;;  %v341_v26 = vadd.f32 1e-05, %v333_v46  ;;  %v1216_v42 = vld [vmem:[#allocation7_spill] sm:$0xff]  ;;  %v1221_v56 = vld [vmem:[#allocation5_spill] sm:$0xff] }
  0x4f   :  { %538 = vrsqrt.f32 %v337_v50  ;;  %v1220_v58 = vld [vmem:[#allocation3_spill] sm:$0xff]  ;;  %v1222_v3 = vld [vmem:[#allocation9_spill] sm:$0xff] }
  0x50   :  { %v334_v57 = vmul.f32 0.03125, %v326_v34  ;;  %540 = vrsqrt.f32 %v338_v12 }
  0x51   :  { %542 = vrsqrt.f32 %v339_v18 }
  0x52   :  { %v342_v4 = vadd.f32 1e-05, %v334_v57  ;;  %544 = vrsqrt.f32 %v340_v55 }
  0x53   :  { %546 = vrsqrt.f32 %v341_v26 }
  0x54   :  { %548 = vrsqrt.f32 %v342_v4 }
  0x5a   :  { %v535_v62 = vpop.eup %534 }
  0x5b   :  { %v537_v38 = vpop.eup %536  ;;  %v359_v16 = vmul.f32 %v535_v62, %v820_v59  ;;  %v360_v0 = vmul.f32 %v535_v62, %v823_v29  ;;  %v362_v51 = vmul.f32 %v535_v62, %v829_v35  ;;  %v361_v49 = vmul.f32 %v535_v62, %v826_v30 }
  0x5c   :  { %v539_v36 = vpop.eup %538  ;;  %v363_v47 = vmul.f32 %v537_v38, %v832_v43  ;;  %v364_v52 = vmul.f32 %v537_v38, %v835_v61  ;;  %v366_v48 = vmul.f32 %v537_v38, %v841_v6  ;;  %v365_v35 = vmul.f32 %v537_v38, %v838_v5 }
  0x5d   :  { %v541_v9 = vpop.eup %540  ;;  %v367_v15 = vmul.f32 %v539_v36, %v844_v17  ;;  %v368_v59 = vmul.f32 %v539_v36, %v847_v7  ;;  %v370_v29 = vmul.f32 %v539_v36, %v853_v23  ;;  %v369_v17 = vmul.f32 %v539_v36, %v850_v8 }
  0x5e   :  { %v543_v63 = vpop.eup %542  ;;  %v371_v11 = vmul.f32 %v541_v9, %v856_v13  ;;  %v372_v21 = vmul.f32 %v541_v9, %v859_v14  ;;  %v374_v43 = vmul.f32 %v541_v9, %v865_v20  ;;  %v373_v7 = vmul.f32 %v541_v9, %v862_v19 }
  0x5f   :  { %v545_v22 = vpop.eup %544  ;;  %v375_v30 = vmul.f32 %v543_v63, %v868_v25  ;;  %v376_v6 = vmul.f32 %v543_v63, %v871_v44  ;;  %v378_v13 = vmul.f32 %v543_v63, %v877_v27 }
  0x60   :  { %v547_v53 = vpop.eup %546  ;;  %v379_v61 = vmul.f32 %v545_v22, %v880_v32  ;;  %v380_v25 = vmul.f32 %v545_v22, %v1217_v31  ;;  %v382_v14 = vmul.f32 %v545_v22, %v1218_v37  ;;  %v377_v32 = vmul.f32 %v543_v63, %v1220_v58 }
  0x61   :  { %v549_v10 = vpop.eup %548  ;;  %v383_v23 = vmul.f32 %v547_v53, %v1216_v42  ;;  %v384_v20 = vmul.f32 %v547_v53, %v1219_v40  ;;  %v386_v8 = vmul.f32 %v547_v53, %v905_v45  ;;  %v381_v44 = vmul.f32 %v545_v22, %v1221_v56 }
  0x62   :  { %v387_v5 = vmul.f32 %v549_v10, %v936_v60  ;;  %v388_v19 = vmul.f32 %v549_v10, %v945_v1  ;;  %v390_v34 = vmul.f32 %v549_v10, %v951_v28  ;;  %v385_v60 = vmul.f32 %v547_v53, %v1222_v3 }
  0x63   :  { %v389_v2 = vmul.f32 %v549_v10, %v948_v24 }
  0x7d   :  { %v404_v54 = vpop.permute.xlu1 %403  ;;  %v394_v27 = vpop.permute.xlu0 %393 }
  0x7e   :  { %v411_v33 = vmul.f32 %v394_v27, %v359_v16  ;;  %v415_v39 = vmul.f32 %v394_v27, %v363_v47  ;;  %v419_v41 = vmul.f32 %v394_v27, %v367_v15  ;;  %v423_v46 = vmul.f32 %v394_v27, %v371_v11 }
  0x7f   :  { %v427_v50 = vmul.f32 %v394_v27, %v375_v30  ;;  %v431_v45 = vmul.f32 %v394_v27, %v379_v61  ;;  %v435_v57 = vmul.f32 %v394_v27, %v383_v23  ;;  %v439_v12 = vmul.f32 %v394_v27, %v387_v5 }
  0x80   :  { %v1043_v18 = vmul.f32 %v404_v54, %v361_v49  ;;  %v1045_v55 = vmul.f32 %v404_v54, %v365_v35  ;;  %v1047_v26 = vmul.f32 %v404_v54, %v369_v17  ;;  %v1049_v1 = vmul.f32 %v404_v54, %v373_v7 }
  0x81   :  { %v409_v28 = vpop.permute.xlu1 %408  ;;  %v399_v4 = vpop.permute.xlu0 %398  ;;  %v1051_v62 = vmul.f32 %v404_v54, %v377_v32  ;;  %v1053_v24 = vmul.f32 %v404_v54, %v381_v44  ;;  %v1055_v38 = vmul.f32 %v404_v54, %v385_v60  ;;  %v1057_v36 = vmul.f32 %v404_v54, %v389_v2 }
  0x82   :  { %v412_v9 = vmul.f32 %v399_v4, %v360_v0  ;;  %v416_v63 = vmul.f32 %v399_v4, %v364_v52  ;;  %v420_v22 = vmul.f32 %v399_v4, %v368_v59  ;;  %v424_v16 = vmul.f32 %v399_v4, %v372_v21 }
  0x83   :  { %v428_v49 = vmul.f32 %v399_v4, %v376_v6  ;;  %v432_v53 = vmul.f32 %v399_v4, %v380_v25  ;;  %v436_v47 = vmul.f32 %v399_v4, %v384_v20  ;;  %v440_v15 = vmul.f32 %v399_v4, %v388_v19 }
  0x84   :  { %v414_v10 = vmul.f32 %v409_v28, %v362_v51  ;;  %v418_v11 = vmul.f32 %v409_v28, %v366_v48  ;;  %v422_v35 = vmul.f32 %v409_v28, %v370_v29  ;;  %v426_v30 = vmul.f32 %v409_v28, %v374_v43 }
  0x85   :  { %v451_v17 = vpop.permute.xlu1 %450  ;;  %v446_v61 = vpop.permute.xlu0 %445  ;;  %v430_v7 = vmul.f32 %v409_v28, %v378_v13  ;;  %v434_v42 = vmul.f32 %v409_v28, %v382_v14  ;;  %v438_v23 = vmul.f32 %v409_v28, %v386_v8  ;;  %v442_v5 = vmul.f32 %v409_v28, %v390_v34 }
  0x86   :  { %v464_v31 = vadd.f32 %v451_v17, %v412_v9  ;;  %v468_v37 = vadd.f32 %v451_v17, %v416_v63  ;;  %v472_v0 = vadd.f32 %v451_v17, %v420_v22  ;;  %v476_v52 = vadd.f32 %v451_v17, %v424_v16 }
  0x87   :  { %v480_v59 = vadd.f32 %v451_v17, %v428_v49  ;;  %v484_v21 = vadd.f32 %v451_v17, %v432_v53  ;;  %v488_v6 = vadd.f32 %v451_v17, %v436_v47  ;;  %v492_v25 = vadd.f32 %v451_v17, %v440_v15 }
  0x88   :  { %496 = vst.msk [vmem:[%s1198_s3 + $0x8] sm:$0xff] %vm46_vm0, %v464_v31  ;;  %500 = vst.msk [vmem:[%s1198_s3 + $0x28] sm:$0xff] %vm46_vm0, %v468_v37  ;;  %v463_v51 = vadd.f32 %v446_v61, %v411_v33  ;;  %v467_v48 = vadd.f32 %v446_v61, %v415_v39  ;;  %v471_v29 = vadd.f32 %v446_v61, %v419_v41 }
  0x89   :  { %504 = vst.msk [vmem:[%s1198_s3 + $0x48] sm:$0xff] %vm46_vm0, %v472_v0  ;;  %508 = vst.msk [vmem:[%s1198_s3 + $0x68] sm:$0xff] %vm46_vm0, %v476_v52  ;;  %v475_v43 = vadd.f32 %v446_v61, %v423_v46  ;;  %v479_v13 = vadd.f32 %v446_v61, %v427_v50  ;;  %v483_v14 = vadd.f32 %v446_v61, %v431_v45  ;;  %v461_v8 = vpop.permute.xlu1 %460  ;;  %v456_v58 = vpop.permute.xlu0 %455 }
  0x8a   :  { %512 = vst.msk [vmem:[%s1198_s3 + $0x88] sm:$0xff] %vm46_vm0, %v480_v59  ;;  %516 = vst.msk [vmem:[%s1198_s3 + $0xa8] sm:$0xff] %vm46_vm0, %v484_v21  ;;  %v487_v40 = vadd.f32 %v446_v61, %v435_v57  ;;  %v491_v20 = vadd.f32 %v446_v61, %v439_v12  ;;  %v466_v32 = vadd.f32 %v461_v8, %v414_v10 }
  0x8b   :  { %520 = vst.msk [vmem:[%s1198_s3 + $0xc8] sm:$0xff] %vm46_vm0, %v488_v6  ;;  %524 = vst.msk [vmem:[%s1198_s3 + $0xe8] sm:$0xff] %vm46_vm0, %v492_v25  ;;  %v470_v56 = vadd.f32 %v461_v8, %v418_v11  ;;  %v474_v44 = vadd.f32 %v461_v8, %v422_v35  ;;  %v478_v54 = vadd.f32 %v461_v8, %v426_v30 }
  0x8c   :  { %495 = vst.msk [vmem:[%s1198_s3] sm:$0xff] %vm46_vm0, %v463_v51  ;;  %499 = vst.msk [vmem:[%s1198_s3 + $0x20] sm:$0xff] %vm46_vm0, %v467_v48  ;;  %v482_v27 = vadd.f32 %v461_v8, %v430_v7  ;;  %v486_v19 = vadd.f32 %v461_v8, %v434_v42  ;;  %v490_v34 = vadd.f32 %v461_v8, %v438_v23 }
  0x8d   :  { %503 = vst.msk [vmem:[%s1198_s3 + $0x40] sm:$0xff] %vm46_vm0, %v471_v29  ;;  %507 = vst.msk [vmem:[%s1198_s3 + $0x60] sm:$0xff] %vm46_vm0, %v475_v43  ;;  %v494_v3 = vadd.f32 %v461_v8, %v442_v5  ;;  %v465_v60 = vadd.f32 %v456_v58, %v1043_v18  ;;  %v469_v2 = vadd.f32 %v456_v58, %v1045_v55 }
  0x8e   :  { %511 = vst.msk [vmem:[%s1198_s3 + $0x80] sm:$0xff] %vm46_vm0, %v479_v13  ;;  %515 = vst.msk [vmem:[%s1198_s3 + $0xa0] sm:$0xff] %vm46_vm0, %v483_v14  ;;  %v473_v33 = vadd.f32 %v456_v58, %v1047_v26  ;;  %v477_v39 = vadd.f32 %v456_v58, %v1049_v1  ;;  %v481_v41 = vadd.f32 %v456_v58, %v1051_v62 }
  0x8f   :  { %519 = vst.msk [vmem:[%s1198_s3 + $0xc0] sm:$0xff] %vm46_vm0, %v487_v40  ;;  %523 = vst.msk [vmem:[%s1198_s3 + $0xe0] sm:$0xff] %vm46_vm0, %v491_v20  ;;  %v485_v46 = vadd.f32 %v456_v58, %v1053_v24  ;;  %v489_v50 = vadd.f32 %v456_v58, %v1055_v38  ;;  %v493_v45 = vadd.f32 %v456_v58, %v1057_v36 }
  0x90   :  { %498 = vst.msk [vmem:[%s1198_s3 + $0x18] sm:$0xff] %vm46_vm0, %v466_v32  ;;  %502 = vst.msk [vmem:[%s1198_s3 + $0x38] sm:$0xff] %vm46_vm0, %v470_v56 }
  0x91   :  { %506 = vst.msk [vmem:[%s1198_s3 + $0x58] sm:$0xff] %vm46_vm0, %v474_v44  ;;  %510 = vst.msk [vmem:[%s1198_s3 + $0x78] sm:$0xff] %vm46_vm0, %v478_v54 }
  0x92   :  { %514 = vst.msk [vmem:[%s1198_s3 + $0x98] sm:$0xff] %vm46_vm0, %v482_v27  ;;  %518 = vst.msk [vmem:[%s1198_s3 + $0xb8] sm:$0xff] %vm46_vm0, %v486_v19 }
  0x93   :  { %522 = vst.msk [vmem:[%s1198_s3 + $0xd8] sm:$0xff] %vm46_vm0, %v490_v34  ;;  %526 = vst.msk [vmem:[%s1198_s3 + $0xf8] sm:$0xff] %vm46_vm0, %v494_v3 }
  0x94   :  { %497 = vst.msk [vmem:[%s1198_s3 + $0x10] sm:$0xff] %vm46_vm0, %v465_v60  ;;  %501 = vst.msk [vmem:[%s1198_s3 + $0x30] sm:$0xff] %vm46_vm0, %v469_v2 }
  0x95   :  { %505 = vst.msk [vmem:[%s1198_s3 + $0x50] sm:$0xff] %vm46_vm0, %v473_v33  ;;  %509 = vst.msk [vmem:[%s1198_s3 + $0x70] sm:$0xff] %vm46_vm0, %v477_v39 }
  0x96   :  { %513 = vst.msk [vmem:[%s1198_s3 + $0x90] sm:$0xff] %vm46_vm0, %v481_v41  ;;  %517 = vst.msk [vmem:[%s1198_s3 + $0xb0] sm:$0xff] %vm46_vm0, %v485_v46 }
  0x97   :  { %521 = vst.msk [vmem:[%s1198_s3 + $0xd0] sm:$0xff] %vm46_vm0, %v489_v50  ;;  %525 = vst.msk [vmem:[%s1198_s3 + $0xf0] sm:$0xff] %vm46_vm0, %v493_v45 }

</bundles_post_ra>
